<compile_context>
chip_gen: v5e
topology: v5e:2x2
jax: 0.10.0
libtpu: 0.0.40
codegen_flags: <defaults>
</compile_context>

<pallas_src>
import functools

import jax
import jax.numpy as jnp
import numpy as np
from jax.experimental import pallas as pl
from jax.experimental.pallas import tpu as pltpu


def _round_up(x, m):
    return ((x + m - 1) // m) * m


def actor_kernel(state_ref, w1_ref, b1_ref, w2_ref, b2_ref, w3_ref, b3_ref,
                 out_ref, *, compute_dtype):
    # fc1 + ReLU  (matmul operands in compute_dtype, accumulate in f32)
    x = state_ref[...]
    h1 = jnp.dot(x.astype(compute_dtype), w1_ref[...].astype(compute_dtype),
                 preferred_element_type=jnp.float32) + b1_ref[...]
    h1 = jnp.maximum(h1, 0.0)

    # fc2 + ReLU
    h2 = jnp.dot(h1.astype(compute_dtype), w2_ref[...].astype(compute_dtype),
                 preferred_element_type=jnp.float32) + b2_ref[...]
    h2 = jnp.maximum(h2, 0.0)

    # fc3 + tanh  (action_size output lanes; EUP handles tanh)
    y = jnp.dot(h2.astype(compute_dtype), w3_ref[...].astype(compute_dtype),
                preferred_element_type=jnp.float32) + b3_ref[...]
    out_ref[...] = jnp.tanh(y)


def actor_forward(state, params, *, block_b=256, compute_dtype=jnp.bfloat16):
    """Run the Actor forward pass with a (optionally batch-tiled) Pallas kernel."""
    w1_t, b1, w2_t, b2, w3_t, b3 = params
    B, S = state.shape
    H1 = w1_t.shape[1]
    H2 = w2_t.shape[1]
    A = w3_t.shape[1]

    # Batch tiling: only tile when the batch is training-sized and divisible;
    # otherwise use a single grid point over the whole (small) batch.
    tb = block_b if (B >= block_b and B % block_b == 0) else B
    grid = (B // tb,)

    kernel = functools.partial(actor_kernel, compute_dtype=compute_dtype)

    flops = 2 * B * (S * H1 + H1 * H2 + H2 * A)
    bytes_accessed = 4 * (S * H1 + H1 + H1 * H2 + H2 + H2 * A + A
                          + B * (S + A))

    return pl.pallas_call(
        kernel,
        out_shape=jax.ShapeDtypeStruct((B, A), jnp.float32),
        grid=grid,
        in_specs=[
            pl.BlockSpec((tb, S), lambda i: (i, 0)),   # state tile
            pl.BlockSpec((S, H1), lambda i: (0, 0)),   # W1 (resident)
            pl.BlockSpec((1, H1), lambda i: (0, 0)),   # b1
            pl.BlockSpec((H1, H2), lambda i: (0, 0)),  # W2 (resident)
            pl.BlockSpec((1, H2), lambda i: (0, 0)),   # b2
            pl.BlockSpec((H2, A), lambda i: (0, 0)),   # W3 (resident)
            pl.BlockSpec((1, A), lambda i: (0, 0)),    # b3
        ],
        out_specs=pl.BlockSpec((tb, A), lambda i: (i, 0)),
        compiler_params=pltpu.CompilerParams(
            dimension_semantics=("parallel",),
            vmem_limit_bytes=16 * 1024 * 1024,
        ),
        cost_estimate=pl.CostEstimate(
            flops=flops,
            transcendentals=B * A,          # tanh
            bytes_accessed=bytes_accessed,
        ),
    )(state, w1_t, b1, w2_t, b2, w3_t, b3)


def init_actor_params(key, state_size, action_size,
                      fc1_units=400, fc2_units=300, pad_multiple=128):
    """Deterministic init replicating Actor.reset_parameters().

    hidden_init uses weight.size()[0] == out_features in the original code,
    so lim = 1/sqrt(out_features) (quirk intentionally replicated).
    Weights are stored pre-transposed as (in, out) and the hidden dims are
    zero-padded to multiples of `pad_multiple`, which leaves results exact.
    """
    k1, k2, k3 = jax.random.split(key, 3)

    lim1 = 1.0 / float(np.sqrt(fc1_units))
    lim2 = 1.0 / float(np.sqrt(fc2_units))

    H1 = _round_up(fc1_units, pad_multiple)
    H2 = _round_up(fc2_units, pad_multiple)

    w1 = jax.random.uniform(k1, (state_size, fc1_units),
                            minval=-lim1, maxval=lim1, dtype=jnp.float32)
    w2 = jax.random.uniform(k2, (fc1_units, fc2_units),
                            minval=-lim2, maxval=lim2, dtype=jnp.float32)
    w3 = jax.random.uniform(k3, (fc2_units, action_size),
                            minval=-0.003, maxval=0.003, dtype=jnp.float32)

    # Zero-padded weights / biases (padded lanes stay exactly 0 through ReLU).
    w1_p = jnp.zeros((state_size, H1), jnp.float32).at[:, :fc1_units].set(w1)
    b1_p = jnp.zeros((1, H1), jnp.float32).at[0, :fc1_units].set(0.1)
    w2_p = jnp.zeros((H1, H2), jnp.float32).at[:fc1_units, :fc2_units].set(w2)
    b2_p = jnp.zeros((1, H2), jnp.float32).at[0, :fc2_units].set(0.1)
    w3_p = jnp.zeros((H2, action_size), jnp.float32).at[:fc2_units, :].set(w3)
    b3 = jnp.full((1, action_size), 0.1, dtype=jnp.float32)

    return (w1_p, b1_p, w2_p, b2_p, w3_p, b3)


def actor_reference(state, params):
    """Pure-JAX f32 reference of the PyTorch forward (use_bn=False).

    Operates on the padded params; padding is zero so this equals the
    unpadded PyTorch computation exactly.
    """
    w1, b1, w2, b2, w3, b3 = params
    h1 = jnp.maximum(state @ w1 + b1, 0.0)
    h2 = jnp.maximum(h1 @ w2 + b2, 0.0)
    return jnp.tanh(h2 @ w3 + b3)


if __name__ == "__main__":
    batch = 8
    state_size = 16
    action_size = 4
    fc1_units = 400   # padded to 512 inside init
    fc2_units = 300   # padded to 384 inside init

    key = jax.random.PRNGKey(0)
    k_state, k_params = jax.random.split(key, 2)

    state = jax.random.normal(k_state, (batch, state_size), dtype=jnp.float32)
    params = init_actor_params(k_params, state_size, action_size,
                               fc1_units, fc2_units)

    ref = actor_reference(state, params)

    # f32 compute path (strict check).
    out_f32 = actor_forward(state, params, compute_dtype=jnp.float32)
    out_f32 = jax.block_until_ready(out_f32)
    assert out_f32.shape == (batch, action_size)
    assert jnp.allclose(out_f32, ref, atol=1e-4, rtol=1e-4), "f32 mismatch"

    # bf16 matmul operands, f32 accumulation (per perf feedback; loose check).
    out_bf16 = actor_forward(state, params, compute_dtype=jnp.bfloat16)
    out_bf16 = jax.block_until_ready(out_bf16)
    assert out_bf16.shape == (batch, action_size)
    assert jnp.all(jnp.abs(out_bf16) <= 1.0), "tanh range violated"
    assert jnp.allclose(out_bf16, ref, atol=3e-2, rtol=3e-2), "bf16 mismatch"

    print("KERNEL_OK")
</pallas_src>

<mosaic_0001>
module attributes {stable_mosaic.version = 11 : i64} {
  func.func @actor_kernel(%arg0: i32, %arg1: memref<8x16xf32, #tpu.memory_space<vmem>>, %arg2: memref<16x512xf32, #tpu.memory_space<vmem>>, %arg3: memref<1x512xf32, #tpu.memory_space<vmem>>, %arg4: memref<512x384xf32, #tpu.memory_space<vmem>>, %arg5: memref<1x384xf32, #tpu.memory_space<vmem>>, %arg6: memref<384x4xf32, #tpu.memory_space<vmem>>, %arg7: memref<1x4xf32, #tpu.memory_space<vmem>>, %arg8: memref<8x4xf32, #tpu.memory_space<vmem>>) attributes {dimension_semantics = [#tpu.dimension_semantics<parallel>], iteration_bounds = array<i64: 1>, scalar_prefetch = 0 : i64, scratch_operands = 0 : i64, tpu.core_type = #tpu.core_type<tc>, window_params = [{transform_indices = @transform_0, window_bounds = array<i64: 8, 16>}, {pipeline_mode = #tpu.pipeline_mode<synchronous>, transform_indices = @transform_1, window_bounds = array<i64: 16, 512>}, {pipeline_mode = #tpu.pipeline_mode<synchronous>, transform_indices = @transform_2, window_bounds = array<i64: 1, 512>}, {pipeline_mode = #tpu.pipeline_mode<synchronous>, transform_indices = @transform_3, window_bounds = array<i64: 512, 384>}, {pipeline_mode = #tpu.pipeline_mode<synchronous>, transform_indices = @transform_4, window_bounds = array<i64: 1, 384>}, {pipeline_mode = #tpu.pipeline_mode<synchronous>, transform_indices = @transform_5, window_bounds = array<i64: 384, 4>}, {pipeline_mode = #tpu.pipeline_mode<synchronous>, transform_indices = @transform_6, window_bounds = array<i64: 1, 4>}, {transform_indices = @transform_7, window_bounds = array<i64: 8, 4>}]} {
    %c0 = arith.constant 0 : index
    %c0_0 = arith.constant 0 : index
    %0 = vector.load %arg1[%c0, %c0_0] : memref<8x16xf32, #tpu.memory_space<vmem>>, vector<8x16xf32>
    %c0_1 = arith.constant 0 : index
    %c0_2 = arith.constant 0 : index
    %1 = vector.load %arg2[%c0_1, %c0_2] : memref<16x512xf32, #tpu.memory_space<vmem>>, vector<16x512xf32>
    %cst = arith.constant dense<0.000000e+00> : vector<8x512xf32>
    %2 = tpu.matmul %0, %1, %cst {dimension_numbers = #tpu.dot_dimension_numbers<[1], [0], [0], [1], [0, 0, 1, 1], [], []>} : vector<8x16xf32>, vector<16x512xf32>, vector<8x512xf32> -> vector<8x512xf32>
    %c0_3 = arith.constant 0 : index
    %c0_4 = arith.constant 0 : index
    %3 = vector.load %arg3[%c0_3, %c0_4] : memref<1x512xf32, #tpu.memory_space<vmem>>, vector<1x512xf32>
    %4 = vector.broadcast %3 : vector<1x512xf32> to vector<8x512xf32>
    %5 = arith.addf %2, %4 : vector<8x512xf32>
    %cst_5 = arith.constant 0.000000e+00 : f32
    %6 = vector.broadcast %cst_5 : f32 to vector<8x512xf32>
    %7 = arith.maximumf %5, %6 : vector<8x512xf32>
    %c0_6 = arith.constant 0 : index
    %c0_7 = arith.constant 0 : index
    %8 = vector.load %arg4[%c0_6, %c0_7] : memref<512x384xf32, #tpu.memory_space<vmem>>, vector<512x384xf32>
    %cst_8 = arith.constant dense<0.000000e+00> : vector<8x384xf32>
    %9 = tpu.matmul %7, %8, %cst_8 {dimension_numbers = #tpu.dot_dimension_numbers<[1], [0], [0], [1], [0, 0, 1, 1], [], []>} : vector<8x512xf32>, vector<512x384xf32>, vector<8x384xf32> -> vector<8x384xf32>
    %c0_9 = arith.constant 0 : index
    %c0_10 = arith.constant 0 : index
    %10 = vector.load %arg5[%c0_9, %c0_10] : memref<1x384xf32, #tpu.memory_space<vmem>>, vector<1x384xf32>
    %11 = vector.broadcast %10 : vector<1x384xf32> to vector<8x384xf32>
    %12 = arith.addf %9, %11 : vector<8x384xf32>
    %cst_11 = arith.constant 0.000000e+00 : f32
    %13 = vector.broadcast %cst_11 : f32 to vector<8x384xf32>
    %14 = arith.maximumf %12, %13 : vector<8x384xf32>
    %c0_12 = arith.constant 0 : index
    %c0_13 = arith.constant 0 : index
    %15 = vector.load %arg6[%c0_12, %c0_13] : memref<384x4xf32, #tpu.memory_space<vmem>>, vector<384x4xf32>
    %cst_14 = arith.constant dense<0.000000e+00> : vector<8x4xf32>
    %16 = tpu.matmul %14, %15, %cst_14 {dimension_numbers = #tpu.dot_dimension_numbers<[1], [0], [0], [1], [0, 0, 1, 1], [], []>} : vector<8x384xf32>, vector<384x4xf32>, vector<8x4xf32> -> vector<8x4xf32>
    %c0_15 = arith.constant 0 : index
    %c0_16 = arith.constant 0 : index
    %17 = vector.load %arg7[%c0_15, %c0_16] : memref<1x4xf32, #tpu.memory_space<vmem>>, vector<1x4xf32>
    %18 = vector.broadcast %17 : vector<1x4xf32> to vector<8x4xf32>
    %19 = arith.addf %16, %18 : vector<8x4xf32>
    %20 = math.tanh %19 : vector<8x4xf32>
    %c0_17 = arith.constant 0 : index
    %c0_18 = arith.constant 0 : index
    %21 = vector.load %arg8[%c0_17, %c0_18] : memref<8x4xf32, #tpu.memory_space<vmem>>, vector<8x4xf32>
    tpu.vector_store %arg8[%c0_17, %c0_18], %20 {strides = array<i32>} : memref<8x4xf32, #tpu.memory_space<vmem>>, vector<8x4xf32>,
    return
  }
  func.func @transform_0(%arg0: i32) -> (i32, i32) {
    %c0_i32 = arith.constant 0 : i32
    %c0_i32_0 = arith.constant 0 : i32
    return %arg0, %c0_i32 : i32, i32
  }
  func.func @transform_1(%arg0: i32) -> (i32, i32) {
    %c0_i32 = arith.constant 0 : i32
    %c0_i32_0 = arith.constant 0 : i32
    %c0_i32_1 = arith.constant 0 : i32
    return %c0_i32, %c0_i32_0 : i32, i32
  }
  func.func @transform_2(%arg0: i32) -> (i32, i32) {
    %c0_i32 = arith.constant 0 : i32
    %c0_i32_0 = arith.constant 0 : i32
    %c0_i32_1 = arith.constant 0 : i32
    return %c0_i32, %c0_i32_0 : i32, i32
  }
  func.func @transform_3(%arg0: i32) -> (i32, i32) {
    %c0_i32 = arith.constant 0 : i32
    %c0_i32_0 = arith.constant 0 : i32
    %c0_i32_1 = arith.constant 0 : i32
    return %c0_i32, %c0_i32_0 : i32, i32
  }
  func.func @transform_4(%arg0: i32) -> (i32, i32) {
    %c0_i32 = arith.constant 0 : i32
    %c0_i32_0 = arith.constant 0 : i32
    %c0_i32_1 = arith.constant 0 : i32
    return %c0_i32, %c0_i32_0 : i32, i32
  }
  func.func @transform_5(%arg0: i32) -> (i32, i32) {
    %c0_i32 = arith.constant 0 : i32
    %c0_i32_0 = arith.constant 0 : i32
    %c0_i32_1 = arith.constant 0 : i32
    return %c0_i32, %c0_i32_0 : i32, i32
  }
  func.func @transform_6(%arg0: i32) -> (i32, i32) {
    %c0_i32 = arith.constant 0 : i32
    %c0_i32_0 = arith.constant 0 : i32
    %c0_i32_1 = arith.constant 0 : i32
    return %c0_i32, %c0_i32_0 : i32, i32
  }
  func.func @transform_7(%arg0: i32) -> (i32, i32) {
    %c0_i32 = arith.constant 0 : i32
    %c0_i32_0 = arith.constant 0 : i32
    return %arg0, %c0_i32 : i32, i32
  }
}

</mosaic_0001>

<bundles_post_ra>
// kernel: tpu_custom_call.1
= control target key start
LH: loop header
LB: loop body
LE: loop exit
PB: predicated region body
PF: predicated region fallthrough
CT: control target
= control target key end

     0   :  { %12 = vsyncpa [#allocation3], 0  ;;  %s748_s27 = smov [#allocation2]   ;;  %s749_s29 = smov 384   ;;  %s1013_s0 = inlined_call_operand.vmem [shape: f32[8,16], index: 0, kind: input, shape index: {}]   ;;  %s1014_s1 = inlined_call_operand.vmem [shape: f32[16,512], index: 1, kind: input, shape index: {}]   ;;  %s1015_s2 = inlined_call_operand.vmem [shape: f32[1,512], index: 2, kind: input, shape index: {}]   ;;  %s1016_s3 = inlined_call_operand.hbm [shape: f32[512,384], index: 3, kind: input, shape index: {}]   ;;  %s1017_s4 = inlined_call_operand.vmem [shape: f32[1,384], index: 4, kind: input, shape index: {}]   ;;  %s1018_s5 = inlined_call_operand.vmem [shape: f32[384,4], index: 5, kind: input, shape index: {}]   ;;  %s1019_s6 = inlined_call_operand.vmem [shape: f32[1,4], index: 6, kind: input, shape index: {}]   ;;  %s1020_s7 = inlined_call_operand.vmem [shape: f32[8,4], index: 7, kind: output, shape index: {}]  }
   0x1   :  { %s23_s26 = sshll.u32 %s1016_s3, 4  ;;  %s25_s28 = sshll.u32 %s748_s27, 4  ;;  %s24_s26 = int_to_ptr.hbm [resolvable:$true] %s23_s26  ;;  %s26_s28 = int_to_ptr.vmem [resolvable:$true] %s25_s28 }
   0x2   :  { %s750_s30 = smov 24  }
   0x3   :  { %31 = dma.hbm_to_vmem [thread:$0]  %s24_s26, 24576, %s26_s28, [#allocation3], %s749_s29, %s749_s29, %s750_s30  }
   0x4   :  { %746 = dma.done.wait [#allocation3], 24576  }
   0x5   :  { %747 = vsyncadd [#allocation3], 4294942720  ;;  %v47_v0 = vld [vmem:[%s1014_s1 + $0x20] sm:$0xff]  ;;  %vm61_vm0 = vcmask 130048   ;;  %v48_v3 = vld [vmem:[%s1014_s1 + $0x28] sm:$0xff]  ;;  %vm705_vm1 = vcmask 31744  }
   0x6   :  { %v43_v1 = vld [vmem:[%s1014_s1] sm:$0xff]  ;;  %79 = vmatpush.msra.mxu3 %v47_v0  ;;  %v194_v4 = vld [vmem:[#allocation2 + $0x168] sm:$0xff]  ;;  %v191_v5 = vld [vmem:[#allocation2 + $0x150] sm:$0xff] }
   0x7   :  { %v803_v2 = vld [vmem:[%s1013_s0] sm:$0xff]  ;;  %v44_v6 = vld [vmem:[%s1014_s1 + $0x8] sm:$0xff]  ;;  %349 = vmatpush.msra.mxu0 %v194_v4  ;;  %v49_v8 = vld [vmem:[%s1014_s1 + $0x30] sm:$0xff] }
   0x8   :  { %80 = vmatpush.msra.mxu3 %v43_v1  ;;  %v242_v7 = vld [vmem:[#allocation2 + $0x2e8] sm:$0xff]  ;;  %v188_v9 = vld [vmem:[#allocation2 + $0x138] sm:$0xff]  ;;  %v239_v10 = vld [vmem:[#allocation2 + $0x2d0] sm:$0xff] }
   0x9   :  { %712 = vmatmul.msk.f32.vlgmr.msra.gmra.mxu3 %vm61_vm0, %v803_v2  ;;  %369 = vmatpush.msra.mxu1 %v242_v7  ;;  %v236_v11 = vld [vmem:[#allocation2 + $0x2b8] sm:$0xff]  ;;  %v45_v12 = vld [vmem:[%s1014_s1 + $0x10] sm:$0xff]  ;;  %v185_v13 = vld [vmem:[#allocation2 + $0x120] sm:$0xff] }
   0xa   :  { %99 = vmatpush.msrb.mxu3 %v48_v3  ;;  %350 = vmatpush.msra.mxu0 %v191_v5  ;;  %v290_v14 = vld [vmem:[#allocation2 + $0x468] sm:$0xff]  ;;  %v233_v15 = vld [vmem:[#allocation2 + $0x2a0] sm:$0xff]  ;;  %v287_v16 = vld [vmem:[#allocation2 + $0x450] sm:$0xff] }
   0xb   :  { %370 = vmatpush.msra.mxu1 %v239_v10  ;;  %v182_v17 = vld [vmem:[#allocation2 + $0x108] sm:$0xff]  ;;  %389 = vmatpush.msra.mxu2 %v290_v14  ;;  %v50_v18 = vld [vmem:[%s1014_s1 + $0x38] sm:$0xff]  ;;  %v179_v20 = vld [vmem:[#allocation2 + $0xf0] sm:$0xff] }
   0xc   :  { %100 = vmatpush.msrb.mxu3 %v44_v6  ;;  %351 = vmatpush.msra.mxu0 %v188_v9  ;;  %v230_v19 = vld [vmem:[#allocation2 + $0x288] sm:$0xff]  ;;  %v284_v21 = vld [vmem:[#allocation2 + $0x438] sm:$0xff]  ;;  %v227_v23 = vld [vmem:[#allocation2 + $0x270] sm:$0xff] }
   0xd   :  { %371 = vmatpush.msra.mxu1 %v236_v11  ;;  %390 = vmatpush.msra.mxu2 %v287_v16  ;;  %v46_v22 = vld [vmem:[%s1014_s1 + $0x18] sm:$0xff]  ;;  %v281_v25 = vld [vmem:[#allocation2 + $0x420] sm:$0xff]  ;;  %v278_v28 = vld [vmem:[#allocation2 + $0x408] sm:$0xff] }
   0xe   :  { %119 = vmatpush.msra.mxu3 %v49_v8  ;;  %352 = vmatpush.msra.mxu0 %v185_v13  ;;  %v176_v24 = vld [vmem:[#allocation2 + $0xd8] sm:$0xff]  ;;  %v173_v27 = vld [vmem:[#allocation2 + $0xc0] sm:$0xff]  ;;  %v170_v30 = vld [vmem:[#allocation2 + $0xa8] sm:$0xff] }
   0xf   :  { %372 = vmatpush.msra.mxu1 %v233_v15  ;;  %v224_v26 = vld [vmem:[#allocation2 + $0x258] sm:$0xff]  ;;  %391 = vmatpush.msra.mxu2 %v284_v21  ;;  %v221_v29 = vld [vmem:[#allocation2 + $0x240] sm:$0xff]  ;;  %v218_v31 = vld [vmem:[#allocation2 + $0x228] sm:$0xff] }
  0x10   :  { %120 = vmatpush.msra.mxu3 %v45_v12  ;;  %353 = vmatpush.msra.mxu0 %v182_v17  ;;  %v338_v32 = vld [vmem:[#allocation2 + $0x5e8] sm:$0xff]  ;;  %v167_v33 = vld [vmem:[#allocation2 + $0x90] sm:$0xff]  ;;  %v164_v37 = vld [vmem:[#allocation2 + $0x78] sm:$0xff] }
  0x11   :  { %713 = vmatmul.msk.f32.vlgmr.msrb.gmra.mxu3 %vm61_vm0, %v803_v2  ;;  %373 = vmatpush.msra.mxu1 %v230_v19  ;;  %v275_v34 = vld [vmem:[#allocation2 + $0x3f0] sm:$0xff]  ;;  %v272_v38 = vld [vmem:[#allocation2 + $0x3d8] sm:$0xff]  ;;  %v161_v41 = vld [vmem:[#allocation2 + $0x60] sm:$0xff] }
  0x12   :  { %139 = vmatpush.msrb.mxu3 %v50_v18  ;;  %354 = vmatpush.msra.mxu0 %v179_v20  ;;  %v215_v35 = vld [vmem:[#allocation2 + $0x210] sm:$0xff]  ;;  %v212_v39 = vld [vmem:[#allocation2 + $0x1f8] sm:$0xff]  ;;  %v269_v42 = vld [vmem:[#allocation2 + $0x3c0] sm:$0xff] }
  0x13   :  { %374 = vmatpush.msra.mxu1 %v227_v23  ;;  %392 = vmatpush.msra.mxu2 %v281_v25  ;;  %v335_v36 = vld [vmem:[#allocation2 + $0x5d0] sm:$0xff]  ;;  %v332_v40 = vld [vmem:[#allocation2 + $0x5b8] sm:$0xff]  ;;  %v209_v43 = vld [vmem:[#allocation2 + $0x1e0] sm:$0xff] }
  0x14   :  { %140 = vmatpush.msrb.mxu3 %v46_v22  ;;  %355 = vmatpush.msra.mxu0 %v176_v24  ;;  %v329_v44 = vld [vmem:[#allocation2 + $0x5a0] sm:$0xff]  ;;  %v158_v45 = vld [vmem:[#allocation2 + $0x48] sm:$0xff]  ;;  %v155_v48 = vld [vmem:[#allocation2 + $0x30] sm:$0xff] }
  0x15   :  { %375 = vmatpush.msra.mxu1 %v224_v26  ;;  %393 = vmatpush.msra.mxu2 %v278_v28  ;;  %v206_v46 = vld [vmem:[#allocation2 + $0x1c8] sm:$0xff]  ;;  %v203_v50 = vld [vmem:[#allocation2 + $0x1b0] sm:$0xff]  ;;  %v152_v52 = vld [vmem:[#allocation2 + $0x18] sm:$0xff] }
  0x16   :  { %356 = vmatpush.msra.mxu0 %v173_v27  ;;  %v266_v47 = vld [vmem:[#allocation2 + $0x3a8] sm:$0xff]  ;;  %v263_v51 = vld [vmem:[#allocation2 + $0x390] sm:$0xff]  ;;  %v200_v54 = vld [vmem:[#allocation2 + $0x198] sm:$0xff] }
  0x17   :  { %376 = vmatpush.msra.mxu1 %v221_v29  ;;  %394 = vmatpush.msra.mxu2 %v275_v34  ;;  %v326_v49 = vld [vmem:[#allocation2 + $0x588] sm:$0xff]  ;;  %v323_v53 = vld [vmem:[#allocation2 + $0x570] sm:$0xff]  ;;  %v260_v55 = vld [vmem:[#allocation2 + $0x378] sm:$0xff] }
  0x18   :  { %357 = vmatpush.msra.mxu0 %v170_v30  ;;  %v149_v56 = vld [vmem:[#allocation2] sm:$0xff]  ;;  %v320_v57 = vld [vmem:[#allocation2 + $0x558] sm:$0xff]  ;;  %v195_v58 = vld [vmem:[#allocation2 + $0x170] sm:$0xff] }
  0x19   :  { %714 = vmatmul.msk.f32.vlgmr.msra.gmra.mxu3 %vm61_vm0, %v803_v2  ;;  %377 = vmatpush.msra.mxu1 %v218_v31  ;;  %v197_v59 = vld [vmem:[#allocation2 + $0x180] sm:$0xff]  ;;  %v192_v62 = vld [vmem:[#allocation2 + $0x158] sm:$0xff]  ;;  %v243_v63 = vld [vmem:[#allocation2 + $0x2f0] sm:$0xff] }
  0x1a   :  { %409 = vmatpush.msra.mxu3 %v338_v32  ;;  %358 = vmatpush.msra.mxu0 %v167_v33  ;;  %v257_v60 = vld [vmem:[#allocation2 + $0x360] sm:$0xff]  ;;  %v254_v0 = vld [vmem:[#allocation2 + $0x348] sm:$0xff]  ;;  %v240_v3 = vld [vmem:[#allocation2 + $0x2d8] sm:$0xff] }
  0x1b   :  { %378 = vmatpush.msra.mxu1 %v215_v35  ;;  %395 = vmatpush.msra.mxu2 %v272_v38  ;;  %v317_v61 = vld [vmem:[#allocation2 + $0x540] sm:$0xff]  ;;  %v314_v1 = vld [vmem:[#allocation2 + $0x528] sm:$0xff]  ;;  %v251_v4 = vld [vmem:[#allocation2 + $0x330] sm:$0xff] }
  0x1c   :  { %410 = vmatpush.msra.mxu3 %v335_v36  ;;  %359 = vmatpush.msra.mxu0 %v164_v37  ;;  %v311_v5 = vld [vmem:[#allocation2 + $0x510] sm:$0xff]  ;;  %v186_v6 = vld [vmem:[#allocation2 + $0x128] sm:$0xff]  ;;  %v237_v7 = vld [vmem:[#allocation2 + $0x2c0] sm:$0xff] }
  0x1d   :  { %379 = vmatpush.msra.mxu1 %v212_v39  ;;  %396 = vmatpush.msra.mxu2 %v269_v42  ;;  %v248_v8 = vld [vmem:[#allocation2 + $0x318] sm:$0xff]  ;;  %v183_v10 = vld [vmem:[#allocation2 + $0x110] sm:$0xff]  ;;  %v234_v11 = vld [vmem:[#allocation2 + $0x2a8] sm:$0xff] }
  0x1e   :  { %411 = vmatpush.msra.mxu3 %v332_v40  ;;  %360 = vmatpush.msra.mxu0 %v161_v41  ;;  %v308_v9 = vld [vmem:[#allocation2 + $0x4f8] sm:$0xff]  ;;  %v245_v12 = vld [vmem:[#allocation2 + $0x300] sm:$0xff]  ;;  %v231_v15 = vld [vmem:[#allocation2 + $0x290] sm:$0xff] }
  0x1f   :  { %380 = vmatpush.msra.mxu1 %v209_v43  ;;  %397 = vmatpush.msra.mxu2 %v266_v47  ;;  %v305_v13 = vld [vmem:[#allocation2 + $0x4e0] sm:$0xff]  ;;  %v180_v14 = vld [vmem:[#allocation2 + $0xf8] sm:$0xff]  ;;  %v291_v16 = vld [vmem:[#allocation2 + $0x470] sm:$0xff] }
  0x20   :  { %412 = vmatpush.msra.mxu3 %v329_v44  ;;  %361 = vmatpush.msra.mxu0 %v158_v45  ;;  %v302_v17 = vld [vmem:[#allocation2 + $0x4c8] sm:$0xff]  ;;  %v177_v18 = vld [vmem:[#allocation2 + $0xe0] sm:$0xff]  ;;  %v228_v19 = vld [vmem:[#allocation2 + $0x278] sm:$0xff] }
  0x21   :  { %715 = vmatmul.msk.f32.vlgmr.msrb.gmra.mxu3 %vm61_vm0, %v803_v2  ;;  %381 = vmatpush.msra.mxu1 %v206_v46  ;;  %v189_v2 = vld [vmem:[#allocation2 + $0x140] sm:$0xff]  ;;  %v288_v20 = vld [vmem:[#allocation2 + $0x458] sm:$0xff]  ;;  %v299_v21 = vld [vmem:[#allocation2 + $0x4b0] sm:$0xff] }
  0x22   :  { %362 = vmatpush.msra.mxu0 %v155_v48  ;;  %413 = vmatpush.msra.mxu3 %v326_v49  ;;  %v174_v22 = vld [vmem:[#allocation2 + $0xc8] sm:$0xff]  ;;  %v225_v23 = vld [vmem:[#allocation2 + $0x260] sm:$0xff]  ;;  %v296_v25 = vld [vmem:[#allocation2 + $0x498] sm:$0xff] }
  0x23   :  { %382 = vmatpush.msra.mxu1 %v203_v50  ;;  %398 = vmatpush.msra.mxu2 %v263_v51  ;;  %v285_v24 = vld [vmem:[#allocation2 + $0x440] sm:$0xff]  ;;  %v171_v26 = vld [vmem:[#allocation2 + $0xb0] sm:$0xff]  ;;  %v222_v27 = vld [vmem:[#allocation2 + $0x248] sm:$0xff] }
  0x24   :  { %363 = vmatpush.msra.mxu0 %v152_v52  ;;  %414 = vmatpush.msra.mxu3 %v323_v53  ;;  %v282_v28 = vld [vmem:[#allocation2 + $0x428] sm:$0xff]  ;;  %v293_v29 = vld [vmem:[#allocation2 + $0x480] sm:$0xff]  ;;  %v168_v30 = vld [vmem:[#allocation2 + $0x98] sm:$0xff] }
  0x25   :  { %383 = vmatpush.msra.mxu1 %v200_v54  ;;  %399 = vmatpush.msra.mxu2 %v260_v55  ;;  %v219_v31 = vld [vmem:[#allocation2 + $0x230] sm:$0xff]  ;;  %v165_v34 = vld [vmem:[#allocation2 + $0x80] sm:$0xff]  ;;  %v162_v35 = vld [vmem:[#allocation2 + $0x68] sm:$0xff] }
  0x26   :  { %364 = vmatpush.msra.mxu0 %v149_v56  ;;  %415 = vmatpush.msra.mxu3 %v320_v57  ;;  %v279_v32 = vld [vmem:[#allocation2 + $0x410] sm:$0xff]  ;;  %v156_v37 = vld [vmem:[#allocation2 + $0x38] sm:$0xff]  ;;  %v153_v41 = vld [vmem:[#allocation2 + $0x20] sm:$0xff] }
  0x27   :  { %384 = vmatpush.msra.mxu1 %v197_v59  ;;  %400 = vmatpush.msra.mxu2 %v257_v60  ;;  %v339_v33 = vld [vmem:[#allocation2 + $0x5f0] sm:$0xff]  ;;  %v216_v38 = vld [vmem:[#allocation2 + $0x218] sm:$0xff]  ;;  %v213_v42 = vld [vmem:[#allocation2 + $0x200] sm:$0xff] }
  0x28   :  { %429 = vmatpush.msrb.mxu0 %v195_v58  ;;  %416 = vmatpush.msra.mxu3 %v317_v61  ;;  %v159_v36 = vld [vmem:[#allocation2 + $0x50] sm:$0xff]  ;;  %v276_v39 = vld [vmem:[#allocation2 + $0x3f8] sm:$0xff]  ;;  %v273_v43 = vld [vmem:[#allocation2 + $0x3e0] sm:$0xff] }
  0x29   :  { %449 = vmatpush.msrb.mxu1 %v243_v63  ;;  %401 = vmatpush.msra.mxu2 %v254_v0  ;;  %v336_v40 = vld [vmem:[#allocation2 + $0x5d8] sm:$0xff]  ;;  %v333_v44 = vld [vmem:[#allocation2 + $0x5c0] sm:$0xff]  ;;  %v150_v45 = vld [vmem:[#allocation2 + $0x8] sm:$0xff] }
  0x2a   :  { %430 = vmatpush.msrb.mxu0 %v192_v62  ;;  %417 = vmatpush.msra.mxu3 %v314_v1  ;;  %v210_v46 = vld [vmem:[#allocation2 + $0x1e8] sm:$0xff]  ;;  %v207_v49 = vld [vmem:[#allocation2 + $0x1d0] sm:$0xff]  ;;  %v204_v52 = vld [vmem:[#allocation2 + $0x1b8] sm:$0xff] }
  0x2b   :  { %450 = vmatpush.msrb.mxu1 %v240_v3  ;;  %402 = vmatpush.msra.mxu2 %v251_v4  ;;  %v270_v47 = vld [vmem:[#allocation2 + $0x3c8] sm:$0xff]  ;;  %v267_v50 = vld [vmem:[#allocation2 + $0x3b0] sm:$0xff]  ;;  %v264_v53 = vld [vmem:[#allocation2 + $0x398] sm:$0xff] }
  0x2c   :  { %431 = vmatpush.msrb.mxu0 %v189_v2  ;;  %418 = vmatpush.msra.mxu3 %v311_v5  ;;  %v330_v48 = vld [vmem:[#allocation2 + $0x5a8] sm:$0xff]  ;;  %v327_v51 = vld [vmem:[#allocation2 + $0x590] sm:$0xff]  ;;  %v324_v54 = vld [vmem:[#allocation2 + $0x578] sm:$0xff] }
  0x2d   :  { %451 = vmatpush.msrb.mxu1 %v237_v7  ;;  %403 = vmatpush.msra.mxu2 %v248_v8  ;;  %v201_v55 = vld [vmem:[#allocation2 + $0x1a0] sm:$0xff]  ;;  %v198_v58 = vld [vmem:[#allocation2 + $0x188] sm:$0xff]  ;;  %v255_v61 = vld [vmem:[#allocation2 + $0x350] sm:$0xff] }
  0x2e   :  { %432 = vmatpush.msrb.mxu0 %v186_v6  ;;  %419 = vmatpush.msra.mxu3 %v308_v9  ;;  %v261_v56 = vld [vmem:[#allocation2 + $0x380] sm:$0xff]  ;;  %v258_v59 = vld [vmem:[#allocation2 + $0x368] sm:$0xff]  ;;  %v315_v62 = vld [vmem:[#allocation2 + $0x530] sm:$0xff] }
  0x2f   :  { %452 = vmatpush.msrb.mxu1 %v234_v11  ;;  %404 = vmatpush.msra.mxu2 %v245_v12  ;;  %v321_v57 = vld [vmem:[#allocation2 + $0x560] sm:$0xff]  ;;  %v318_v60 = vld [vmem:[#allocation2 + $0x548] sm:$0xff]  ;;  %v252_v63 = vld [vmem:[#allocation2 + $0x338] sm:$0xff] }
  0x30   :  { %433 = vmatpush.msrb.mxu0 %v183_v10  ;;  %420 = vmatpush.msra.mxu3 %v305_v13  ;;  %v312_v0 = vld [vmem:[#allocation2 + $0x518] sm:$0xff]  ;;  %v249_v1 = vld [vmem:[#allocation2 + $0x320] sm:$0xff]  ;;  %v246_v3 = vld [vmem:[#allocation2 + $0x308] sm:$0xff] }
  0x31   :  { %453 = vmatpush.msrb.mxu1 %v231_v15  ;;  %469 = vmatpush.msrb.mxu2 %v291_v16  ;;  %v309_v2 = vld [vmem:[#allocation2 + $0x500] sm:$0xff]  ;;  %v306_v4 = vld [vmem:[#allocation2 + $0x4e8] sm:$0xff]  ;;  %v303_v5 = vld [vmem:[#allocation2 + $0x4d0] sm:$0xff] }
  0x32   :  { %434 = vmatpush.msrb.mxu0 %v180_v14  ;;  %421 = vmatpush.msra.mxu3 %v302_v17  ;;  %v300_v6 = vld [vmem:[#allocation2 + $0x4b8] sm:$0xff]  ;;  %v834_v7 = vld [vmem:[%s1015_s2] sm:$0xf]  ;;  %v294_v10 = vld [vmem:[#allocation2 + $0x488] sm:$0xff] }
  0x33   :  { %454 = vmatpush.msrb.mxu1 %v228_v19  ;;  %470 = vmatpush.msrb.mxu2 %v288_v20  ;;  %v297_v8 = vld [vmem:[#allocation2 + $0x4a0] sm:$0xff]  ;;  %v53_v9 = vperm.slane %v834_v7, 0  ;;  %v196_v14 = vld [vmem:[#allocation2 + $0x178] sm:$0xff]  ;;  %v54_v16 = vperm.slane %v834_v7, 1  ;;  %v190_v17 = vld [vmem:[#allocation2 + $0x148] sm:$0xff] }
  0x34   :  { %435 = vmatpush.msrb.mxu0 %v177_v18  ;;  %422 = vmatpush.msra.mxu3 %v299_v21  ;;  %v193_v15 = vld [vmem:[#allocation2 + $0x160] sm:$0xff]  ;;  %v187_v20 = vld [vmem:[#allocation2 + $0x130] sm:$0xff] }
  0x35   :  { %455 = vmatpush.msrb.mxu1 %v225_v23  ;;  %471 = vmatpush.msrb.mxu2 %v285_v24  ;;  %v244_v23 = vld [vmem:[#allocation2 + $0x2f8] sm:$0xff]  ;;  %v181_v24 = vld [vmem:[#allocation2 + $0x100] sm:$0xff] }
  0x36   :  { %436 = vmatpush.msrb.mxu0 %v174_v22  ;;  %423 = vmatpush.msra.mxu3 %v296_v25  ;;  %v184_v22 = vld [vmem:[#allocation2 + $0x118] sm:$0xff]  ;;  %v241_v25 = vld [vmem:[#allocation2 + $0x2e0] sm:$0xff] }
  0x37   :  { %456 = vmatpush.msrb.mxu1 %v222_v27  ;;  %472 = vmatpush.msrb.mxu2 %v282_v28  ;;  %v178_v27 = vld [vmem:[#allocation2 + $0xe8] sm:$0xff] }
  0x38   :  { %437 = vmatpush.msrb.mxu0 %v171_v26  ;;  %424 = vmatpush.msra.mxu3 %v293_v29  ;;  %v55_v26 = vperm.slane %v834_v7, 2  ;;  %v238_v28 = vld [vmem:[#allocation2 + $0x2c8] sm:$0xff] }
  0x39   :  { %457 = vmatpush.msrb.mxu1 %v219_v31  ;;  %473 = vmatpush.msrb.mxu2 %v279_v32  ;;  %v175_v31 = vld [vmem:[#allocation2 + $0xd0] sm:$0xff] }
  0x3a   :  { %438 = vmatpush.msrb.mxu0 %v168_v30  ;;  %489 = vmatpush.msrb.mxu3 %v339_v33  ;;  %v235_v32 = vld [vmem:[#allocation2 + $0x2b0] sm:$0xff] }
  0x3b   :  { %458 = vmatpush.msrb.mxu1 %v216_v38  ;;  %474 = vmatpush.msrb.mxu2 %v276_v39  ;;  %v229_v38 = vld [vmem:[#allocation2 + $0x280] sm:$0xff]  ;;  %v56_v39 = vperm.slane %v834_v7, 3 }
  0x3c   :  { %439 = vmatpush.msrb.mxu0 %v165_v34  ;;  %490 = vmatpush.msrb.mxu3 %v336_v40  ;;  %v172_v34 = vld [vmem:[#allocation2 + $0xb8] sm:$0xff]  ;;  %v289_v40 = vld [vmem:[#allocation2 + $0x460] sm:$0xff] }
  0x3d   :  { %459 = vmatpush.msrb.mxu1 %v213_v42  ;;  %475 = vmatpush.msrb.mxu2 %v273_v43  ;;  %v226_v42 = vld [vmem:[#allocation2 + $0x268] sm:$0xff]  ;;  %v325_v7 = vld [vmem:[#allocation2 + $0x580] sm:$0xff] }
  0x3e   :  { %440 = vmatpush.msrb.mxu0 %v162_v35  ;;  %491 = vmatpush.msrb.mxu3 %v333_v44  ;;  %v232_v35 = vld [vmem:[#allocation2 + $0x298] sm:$0xff]  ;;  %v286_v44 = vld [vmem:[#allocation2 + $0x448] sm:$0xff] }
  0x3f   :  { %460 = vmatpush.msrb.mxu1 %v210_v46  ;;  %476 = vmatpush.msrb.mxu2 %v270_v47  ;;  %v163_v46 = vld [vmem:[#allocation2 + $0x70] sm:$0xff] }
  0x40   :  { %441 = vmatpush.msrb.mxu0 %v159_v36  ;;  %492 = vmatpush.msrb.mxu3 %v330_v48  ;;  %v292_v36 = vld [vmem:[#allocation2 + $0x478] sm:$0xff]  ;;  %v223_v47 = vld [vmem:[#allocation2 + $0x250] sm:$0xff] }
  0x41   :  { %461 = vmatpush.msrb.mxu1 %v207_v49  ;;  %477 = vmatpush.msrb.mxu2 %v267_v50  ;;  %v283_v48 = vld [vmem:[#allocation2 + $0x430] sm:$0xff]  ;;  %v160_v50 = vld [vmem:[#allocation2 + $0x58] sm:$0xff] }
  0x42   :  { %442 = vmatpush.msrb.mxu0 %v156_v37  ;;  %493 = vmatpush.msrb.mxu3 %v327_v51  ;;  %v169_v37 = vld [vmem:[#allocation2 + $0xa0] sm:$0xff]  ;;  %v220_v51 = vld [vmem:[#allocation2 + $0x238] sm:$0xff] }
  0x43   :  { %462 = vmatpush.msrb.mxu1 %v204_v52  ;;  %478 = vmatpush.msrb.mxu2 %v264_v53  ;;  %v280_v52 = vld [vmem:[#allocation2 + $0x418] sm:$0xff] }
  0x44   :  { %443 = vmatpush.msrb.mxu0 %v153_v41  ;;  %494 = vmatpush.msrb.mxu3 %v324_v54  ;;  %v166_v41 = vld [vmem:[#allocation2 + $0x88] sm:$0xff]  ;;  %v340_v53 = vld [vmem:[#allocation2 + $0x5f8] sm:$0xff]  ;;  %v157_v54 = vld [vmem:[#allocation2 + $0x40] sm:$0xff] }
  0x45   :  { %463 = vmatpush.msrb.mxu1 %v201_v55  ;;  %479 = vmatpush.msrb.mxu2 %v261_v56  ;;  %v217_v55 = vld [vmem:[#allocation2 + $0x220] sm:$0xff] }
  0x46   :  { %444 = vmatpush.msrb.mxu0 %v150_v45  ;;  %495 = vmatpush.msrb.mxu3 %v321_v57  ;;  %v277_v56 = vld [vmem:[#allocation2 + $0x400] sm:$0xff] }
  0x47   :  { %464 = vmatpush.msrb.mxu1 %v198_v58  ;;  %480 = vmatpush.msrb.mxu2 %v258_v59  ;;  %v337_v57 = vld [vmem:[#allocation2 + $0x5e0] sm:$0xff]  ;;  %v154_v58 = vld [vmem:[#allocation2 + $0x28] sm:$0xff] }
  0x48   :  { %496 = vmatpush.msrb.mxu3 %v318_v60  ;;  %v214_v59 = vld [vmem:[#allocation2 + $0x208] sm:$0xff] }
  0x49   :  { %481 = vmatpush.msrb.mxu2 %v255_v61  ;;  %v274_v60 = vld [vmem:[#allocation2 + $0x3e8] sm:$0xff] }
  0x4a   :  { %497 = vmatpush.msrb.mxu3 %v315_v62  ;;  %v334_v61 = vld [vmem:[#allocation2 + $0x5c8] sm:$0xff]  ;;  %v151_v62 = vld [vmem:[#allocation2 + $0x10] sm:$0xff] }
  0x4b   :  { %482 = vmatpush.msrb.mxu2 %v252_v63  ;;  %v211_v63 = vld [vmem:[#allocation2 + $0x1f0] sm:$0xff] }
  0x4c   :  { %498 = vmatpush.msrb.mxu3 %v312_v0  ;;  %v271_v0 = vld [vmem:[#allocation2 + $0x3d0] sm:$0xff] }
  0x4d   :  { %483 = vmatpush.msrb.mxu2 %v249_v1  ;;  %v331_v1 = vld [vmem:[#allocation2 + $0x5b0] sm:$0xff] }
  0x4e   :  { %499 = vmatpush.msrb.mxu3 %v309_v2  ;;  %v208_v2 = vld [vmem:[#allocation2 + $0x1d8] sm:$0xff] }
  0x4f   :  { %484 = vmatpush.msrb.mxu2 %v246_v3  ;;  %v268_v3 = vld [vmem:[#allocation2 + $0x3b8] sm:$0xff] }
  0x50   :  { %500 = vmatpush.msrb.mxu3 %v306_v4  ;;  %v328_v4 = vld [vmem:[#allocation2 + $0x598] sm:$0xff] }
  0x52   :  { %501 = vmatpush.msrb.mxu3 %v303_v5  ;;  %v205_v5 = vld [vmem:[#allocation2 + $0x1c0] sm:$0xff] }
  0x54   :  { %502 = vmatpush.msrb.mxu3 %v300_v6  ;;  %v265_v6 = vld [vmem:[#allocation2 + $0x3a0] sm:$0xff] }
  0x56   :  { %503 = vmatpush.msrb.mxu3 %v297_v8  ;;  %v202_v8 = vld [vmem:[#allocation2 + $0x1a8] sm:$0xff] }
  0x58   :  { %504 = vmatpush.msrb.mxu3 %v294_v10  ;;  %v322_v10 = vld [vmem:[#allocation2 + $0x568] sm:$0xff] }
  0x8c   :  { %v82_v11 = vpop.f32.mrf.mxu3 }
  0x8d   :  { %v83_v12 = vadd.f32 %v82_v11, %v53_v9  ;;  %v262_v9 = vld [vmem:[#allocation2 + $0x388] sm:$0xff]  ;;  %v199_v11 = vld [vmem:[#allocation2 + $0x190] sm:$0xff] }
  0x8f   :  { %v837_v13 = vmax.f32 %v83_v12, 0.0  ;;  %v259_v12 = vld [vmem:[#allocation2 + $0x370] sm:$0xff] }
  0x91   :  { %365 = vmatmul.f32.vlgmr.msra.gmra.mxu0 %v837_v13 }
  0x92   :  { %509 = vmatpush.msra.mxu0 %v196_v14  ;;  %v319_v14 = vld [vmem:[#allocation2 + $0x550] sm:$0xff] }
  0x94   :  { %510 = vmatpush.msra.mxu0 %v193_v15  ;;  %v102_v18 = vpop.f32.mrf.mxu3  ;;  %v316_v15 = vld [vmem:[#allocation2 + $0x538] sm:$0xff] }
  0x95   :  { %v103_v19 = vadd.f32 %v102_v18, %v54_v16  ;;  %v253_v16 = vld [vmem:[#allocation2 + $0x340] sm:$0xff]  ;;  %v250_v18 = vld [vmem:[#allocation2 + $0x328] sm:$0xff] }
  0x96   :  { %511 = vmatpush.msra.mxu0 %v190_v17  ;;  %v313_v17 = vld [vmem:[#allocation2 + $0x520] sm:$0xff] }
  0x97   :  { %v841_v21 = vmax.f32 %v103_v19, 0.0  ;;  %v310_v19 = vld [vmem:[#allocation2 + $0x508] sm:$0xff] }
  0x98   :  { %512 = vmatpush.msra.mxu0 %v187_v20  ;;  %v247_v20 = vld [vmem:[#allocation2 + $0x310] sm:$0xff] }
  0x99   :  { %385 = vmatmul.f32.vlgmr.msra.gmra.mxu1 %v841_v21  ;;  %445 = vmatmul.f32.vlgmr.msrb.gmra.mxu0 %v837_v13 }
  0x9a   :  { %513 = vmatpush.msra.mxu0 %v184_v22  ;;  %529 = vmatpush.msra.mxu1 %v244_v23  ;;  %v307_v22 = vld [vmem:[#allocation2 + $0x4f0] sm:$0xff]  ;;  %v304_v23 = vld [vmem:[#allocation2 + $0x4d8] sm:$0xff] }
  0x9c   :  { %514 = vmatpush.msra.mxu0 %v181_v24  ;;  %530 = vmatpush.msra.mxu1 %v241_v25  ;;  %v122_v29 = vpop.f32.mrf.mxu3  ;;  %v301_v24 = vld [vmem:[#allocation2 + $0x4c0] sm:$0xff]  ;;  %v295_v25 = vld [vmem:[#allocation2 + $0x490] sm:$0xff] }
  0x9d   :  { %v123_v30 = vadd.f32 %v122_v29, %v55_v26  ;;  %v607_v26 = vld [vmem:[%s1018_s5 + $0x78] sm:$0xff]  ;;  %v604_v29 = vld [vmem:[%s1018_s5 + $0x60] sm:$0xff] }
  0x9e   :  { %515 = vmatpush.msra.mxu0 %v178_v27  ;;  %531 = vmatpush.msra.mxu1 %v238_v28  ;;  %v606_v27 = vld [vmem:[%s1018_s5 + $0x70] sm:$0xff]  ;;  %v605_v28 = vld [vmem:[%s1018_s5 + $0x68] sm:$0xff] }
  0x9f   :  { %v846_v33 = vmax.f32 %v123_v30, 0.0  ;;  %v623_v30 = vld [vmem:[%s1018_s5 + $0xf8] sm:$0xff] }
  0xa0   :  { %516 = vmatpush.msra.mxu0 %v175_v31  ;;  %532 = vmatpush.msra.mxu1 %v235_v32  ;;  %v622_v31 = vld [vmem:[%s1018_s5 + $0xf0] sm:$0xff]  ;;  %v603_v32 = vld [vmem:[%s1018_s5 + $0x58] sm:$0xff] }
  0xa1   :  { %405 = vmatmul.f32.vlgmr.msra.gmra.mxu2 %v846_v33  ;;  %465 = vmatmul.f32.vlgmr.msrb.gmra.mxu1 %v841_v21 }
  0xa2   :  { %517 = vmatpush.msra.mxu0 %v172_v34  ;;  %533 = vmatpush.msra.mxu1 %v232_v35  ;;  %v601_v34 = vld [vmem:[%s1018_s5 + $0x48] sm:$0xff] }
  0xa3   :  { %549 = vmatpush.msra.mxu2 %v292_v36  ;;  %v621_v35 = vld [vmem:[%s1018_s5 + $0xe8] sm:$0xff]  ;;  %v600_v36 = vld [vmem:[%s1018_s5 + $0x40] sm:$0xff] }
  0xa4   :  { %518 = vmatpush.msra.mxu0 %v169_v37  ;;  %534 = vmatpush.msra.mxu1 %v229_v38  ;;  %v142_v43 = vpop.f32.mrf.mxu3  ;;  %v620_v37 = vld [vmem:[%s1018_s5 + $0xe0] sm:$0xff]  ;;  %v599_v38 = vld [vmem:[%s1018_s5 + $0x38] sm:$0xff] }
  0xa5   :  { %550 = vmatpush.msra.mxu2 %v289_v40  ;;  %v143_v45 = vadd.f32 %v142_v43, %v56_v39  ;;  %v619_v39 = vld [vmem:[%s1018_s5 + $0xd8] sm:$0xff]  ;;  %v598_v40 = vld [vmem:[%s1018_s5 + $0x30] sm:$0xff]  ;;  %v617_v43 = vld [vmem:[%s1018_s5 + $0xc8] sm:$0xff] }
  0xa6   :  { %519 = vmatpush.msra.mxu0 %v166_v41  ;;  %535 = vmatpush.msra.mxu1 %v226_v42  ;;  %v618_v41 = vld [vmem:[%s1018_s5 + $0xd0] sm:$0xff]  ;;  %v597_v42 = vld [vmem:[%s1018_s5 + $0x28] sm:$0xff] }
  0xa7   :  { %v851_v49 = vmax.f32 %v143_v45, 0.0  ;;  %551 = vmatpush.msra.mxu2 %v286_v44  ;;  %v596_v44 = vld [vmem:[%s1018_s5 + $0x20] sm:$0xff] }
  0xa8   :  { %520 = vmatpush.msra.mxu0 %v163_v46  ;;  %536 = vmatpush.msra.mxu1 %v223_v47  ;;  %v616_v45 = vld [vmem:[%s1018_s5 + $0xc0] sm:$0xff]  ;;  %v595_v46 = vld [vmem:[%s1018_s5 + $0x18] sm:$0xff] }
  0xa9   :  { %552 = vmatpush.msra.mxu2 %v283_v48  ;;  %425 = vmatmul.f32.vlgmr.msra.gmra.mxu3 %v851_v49  ;;  %v615_v47 = vld [vmem:[%s1018_s5 + $0xb8] sm:$0xff]  ;;  %v594_v48 = vld [vmem:[%s1018_s5 + $0x10] sm:$0xff] }
  0xaa   :  { %485 = vmatmul.f32.vlgmr.msrb.gmra.mxu2 %v846_v33  ;;  %521 = vmatpush.msra.mxu0 %v160_v50  ;;  %v593_v50 = vld [vmem:[%s1018_s5 + $0x8] sm:$0xff] }
  0xab   :  { %537 = vmatpush.msra.mxu1 %v220_v51  ;;  %553 = vmatpush.msra.mxu2 %v280_v52  ;;  %v613_v51 = vld [vmem:[%s1018_s5 + $0xa8] sm:$0xff]  ;;  %v592_v52 = vld [vmem:[%s1018_s5] sm:$0xff] }
  0xac   :  { %569 = vmatpush.msra.mxu3 %v340_v53  ;;  %522 = vmatpush.msra.mxu0 %v157_v54  ;;  %v612_v53 = vld [vmem:[%s1018_s5 + $0xa0] sm:$0xff]  ;;  %v639_v54 = vld [vmem:[%s1018_s5 + $0x178] sm:$0xff] }
  0xad   :  { %538 = vmatpush.msra.mxu1 %v217_v55  ;;  %554 = vmatpush.msra.mxu2 %v277_v56  ;;  %v611_v55 = vld [vmem:[%s1018_s5 + $0x98] sm:$0xff]  ;;  %v638_v56 = vld [vmem:[%s1018_s5 + $0x170] sm:$0xff] }
  0xae   :  { %570 = vmatpush.msra.mxu3 %v337_v57  ;;  %523 = vmatpush.msra.mxu0 %v154_v58  ;;  %v610_v57 = vld [vmem:[%s1018_s5 + $0x90] sm:$0xff]  ;;  %v637_v58 = vld [vmem:[%s1018_s5 + $0x168] sm:$0xff] }
  0xaf   :  { %539 = vmatpush.msra.mxu1 %v214_v59  ;;  %555 = vmatpush.msra.mxu2 %v274_v60  ;;  %v609_v59 = vld [vmem:[%s1018_s5 + $0x88] sm:$0xff]  ;;  %v636_v60 = vld [vmem:[%s1018_s5 + $0x160] sm:$0xff] }
  0xb0   :  { %571 = vmatpush.msra.mxu3 %v334_v61  ;;  %524 = vmatpush.msra.mxu0 %v151_v62  ;;  %v608_v61 = vld [vmem:[%s1018_s5 + $0x80] sm:$0xff]  ;;  %v635_v62 = vld [vmem:[%s1018_s5 + $0x158] sm:$0xff] }
  0xb1   :  { %540 = vmatpush.msra.mxu1 %v211_v63  ;;  %556 = vmatpush.msra.mxu2 %v271_v0  ;;  %v634_v63 = vld [vmem:[%s1018_s5 + $0x150] sm:$0xff]  ;;  %v633_v0 = vld [vmem:[%s1018_s5 + $0x148] sm:$0xff] }
  0xb2   :  { %572 = vmatpush.msra.mxu3 %v331_v1  ;;  %525 = vmatmul.f32.vlgmr.msra.gmra.mxu0 %v837_v13  ;;  %v256_v13 = vld [vmem:[#allocation2 + $0x358] sm:$0xff]  ;;  %v632_v1 = vld [vmem:[%s1018_s5 + $0x140] sm:$0xff] }
  0xb3   :  { %505 = vmatmul.f32.vlgmr.msrb.gmra.mxu3 %v851_v49  ;;  %541 = vmatpush.msra.mxu1 %v208_v2  ;;  %v341_v2 = vld [vmem:[%s1017_s4] sm:$0x7] }
  0xb4   :  { %557 = vmatpush.msra.mxu2 %v268_v3  ;;  %573 = vmatpush.msra.mxu3 %v328_v4  ;;  %v631_v3 = vld [vmem:[%s1018_s5 + $0x138] sm:$0xff]  ;;  %v343_v4 = vperm.slane %v341_v2, 0 }
  0xb5   :  { %542 = vmatpush.msra.mxu1 %v205_v5  ;;  %644 = vmatpush.msrb.mxu0 %v607_v26 }
  0xb6   :  { %558 = vmatpush.msra.mxu2 %v265_v6  ;;  %574 = vmatpush.msra.mxu3 %v325_v7  ;;  %v630_v6 = vld [vmem:[%s1018_s5 + $0x130] sm:$0xff] }
  0xb7   :  { %543 = vmatpush.msra.mxu1 %v202_v8  ;;  %645 = vmatpush.msrb.mxu0 %v606_v27 }
  0xb8   :  { %559 = vmatpush.msra.mxu2 %v262_v9  ;;  %575 = vmatpush.msra.mxu3 %v322_v10  ;;  %v629_v9 = vld [vmem:[%s1018_s5 + $0x128] sm:$0xff]  ;;  %v628_v10 = vld [vmem:[%s1018_s5 + $0x120] sm:$0xff] }
  0xb9   :  { %544 = vmatpush.msra.mxu1 %v199_v11  ;;  %646 = vmatpush.msrb.mxu0 %v605_v28 }
  0xba   :  { %560 = vmatpush.msra.mxu2 %v259_v12  ;;  %576 = vmatpush.msra.mxu3 %v319_v14  ;;  %v627_v14 = vld [vmem:[%s1018_s5 + $0x118] sm:$0xff] }
  0xbb   :  { %545 = vmatmul.f32.vlgmr.msra.gmra.mxu1 %v841_v21  ;;  %v298_v21 = vld [vmem:[#allocation2 + $0x4a8] sm:$0xff]  ;;  %647 = vmatpush.msrb.mxu0 %v604_v29 }
  0xbc   :  { %561 = vmatpush.msra.mxu2 %v256_v13  ;;  %577 = vmatpush.msra.mxu3 %v316_v15 }
  0xbd   :  { %664 = vmatpush.msrb.mxu1 %v623_v30  ;;  %648 = vmatpush.msrb.mxu0 %v603_v32 }
  0xbe   :  { %562 = vmatpush.msra.mxu2 %v253_v16  ;;  %578 = vmatpush.msra.mxu3 %v313_v17  ;;  %v344_v16 = vperm.slane %v341_v2, 1 }
  0xbf   :  { %665 = vmatpush.msrb.mxu1 %v622_v31  ;;  %v345_v31 = vperm.slane %v341_v2, 2 }
  0xc0   :  { %563 = vmatpush.msra.mxu2 %v250_v18  ;;  %579 = vmatpush.msra.mxu3 %v310_v19  ;;  %v626_v18 = vld [vmem:[%s1018_s5 + $0x110] sm:$0xff] }
  0xc1   :  { %666 = vmatpush.msrb.mxu1 %v621_v35 }
  0xc2   :  { %564 = vmatpush.msra.mxu2 %v247_v20  ;;  %580 = vmatpush.msra.mxu3 %v307_v22  ;;  %v625_v22 = vld [vmem:[%s1018_s5 + $0x108] sm:$0xff] }
  0xc3   :  { %565 = vmatmul.f32.vlgmr.msra.gmra.mxu2 %v846_v33  ;;  %v602_v33 = vld [vmem:[%s1018_s5 + $0x50] sm:$0xff]  ;;  %667 = vmatpush.msrb.mxu1 %v620_v37 }
  0xc4   :  { %581 = vmatpush.msra.mxu3 %v304_v23  ;;  %649 = vmatpush.msrb.mxu0 %v602_v33 }
  0xc5   :  { %668 = vmatpush.msrb.mxu1 %v619_v39  ;;  %684 = vmatpush.msrb.mxu2 %v639_v54 }
  0xc6   :  { %582 = vmatpush.msra.mxu3 %v301_v24  ;;  %650 = vmatpush.msrb.mxu0 %v601_v34 }
  0xc7   :  { %669 = vmatpush.msrb.mxu1 %v618_v41  ;;  %685 = vmatpush.msrb.mxu2 %v638_v56  ;;  %v719_v41 = vld [vmem:[%s1019_s6] ss:$0 sm:$0xff] }
  0xc8   :  { %583 = vmatpush.msra.mxu3 %v298_v21  ;;  %651 = vmatpush.msrb.mxu0 %v600_v36  ;;  %v624_v21 = vld [vmem:[%s1018_s5 + $0x100] sm:$0xff] }
  0xc9   :  { %670 = vmatpush.msrb.mxu1 %v617_v43  ;;  %686 = vmatpush.msrb.mxu2 %v637_v58 }
  0xca   :  { %584 = vmatpush.msra.mxu3 %v295_v25  ;;  %652 = vmatpush.msrb.mxu0 %v599_v38 }
  0xcb   :  { %585 = vmatmul.f32.vlgmr.msra.gmra.mxu3 %v851_v49  ;;  %671 = vmatpush.msrb.mxu1 %v616_v45  ;;  %v614_v49 = vld [vmem:[%s1018_s5 + $0xb0] sm:$0xff] }
  0xcc   :  { %653 = vmatpush.msrb.mxu0 %v598_v40  ;;  %687 = vmatpush.msrb.mxu2 %v636_v60 }
  0xcd   :  { %672 = vmatpush.msrb.mxu1 %v615_v47 }
  0xce   :  { %654 = vmatpush.msrb.mxu0 %v597_v42  ;;  %688 = vmatpush.msrb.mxu2 %v635_v62 }
  0xcf   :  { %673 = vmatpush.msrb.mxu1 %v614_v49 }
  0xd0   :  { %655 = vmatpush.msrb.mxu0 %v596_v44  ;;  %689 = vmatpush.msrb.mxu2 %v634_v63 }
  0xd1   :  { %674 = vmatpush.msrb.mxu1 %v613_v51 }
  0xd2   :  { %656 = vmatpush.msrb.mxu0 %v595_v46  ;;  %690 = vmatpush.msrb.mxu2 %v633_v0 }
  0xd3   :  { %675 = vmatpush.msrb.mxu1 %v612_v53 }
  0xd4   :  { %657 = vmatpush.msrb.mxu0 %v594_v48  ;;  %691 = vmatpush.msrb.mxu2 %v632_v1 }
  0xd5   :  { %676 = vmatpush.msrb.mxu1 %v611_v55 }
  0xd6   :  { %658 = vmatpush.msrb.mxu0 %v593_v50  ;;  %692 = vmatpush.msrb.mxu2 %v631_v3 }
  0xd7   :  { %677 = vmatpush.msrb.mxu1 %v610_v57 }
  0xd8   :  { %659 = vmatpush.msrb.mxu0 %v592_v52  ;;  %693 = vmatpush.msrb.mxu2 %v630_v6 }
  0xd9   :  { %678 = vmatpush.msrb.mxu1 %v609_v59 }
  0xda   :  { %694 = vmatpush.msrb.mxu2 %v629_v9 }
  0xdb   :  { %679 = vmatpush.msrb.mxu1 %v608_v61 }
  0xdc   :  { %695 = vmatpush.msrb.mxu2 %v628_v10 }
  0xde   :  { %696 = vmatpush.msrb.mxu2 %v627_v14 }
  0xe0   :  { %697 = vmatpush.msrb.mxu2 %v626_v18 }
  0xe2   :  { %698 = vmatpush.msrb.mxu2 %v625_v22 }
  0xe4   :  { %699 = vmatpush.msrb.mxu2 %v624_v21 }
 0x10e   :  { %v366_v5 = vpop.f32.mrf.mxu0 }
 0x10f   :  { %v367_v8 = vadd.f32 %v366_v5, %v343_v4 }
 0x116   :  { %v386_v7 = vpop.f32.mrf.mxu1  ;;  %v446_v19 = vpop.f32.mrf.mxu0 }
 0x117   :  { %v387_v12 = vadd.f32 %v386_v7, %v367_v8  ;;  %v447_v24 = vadd.f32 %v446_v19, %v344_v16 }
 0x11e   :  { %v466_v23 = vpop.f32.mrf.mxu1 }
 0x11f   :  { %v467_v26 = vadd.f32 %v466_v23, %v447_v24 }
 0x124   :  { %v406_v11 = vpop.f32.mrf.mxu2 }
 0x125   :  { %v407_v13 = vadd.f32 %v406_v11, %v387_v12 }
 0x12c   :  { %v426_v15 = vpop.f32.mrf.mxu3 }
 0x12d   :  { %v427_v17 = vadd.f32 %v426_v15, %v407_v13  ;;  %v486_v25 = vpop.f32.mrf.mxu2 }
 0x12e   :  { %v487_v27 = vadd.f32 %v486_v25, %v467_v26 }
 0x12f   :  { %v589_v20 = vmax.f32 %v427_v17, 0.0  ;;  %v526_v32 = vpop.f32.mrf.mxu0 }
 0x130   :  { %v527_v34 = vadd.f32 %v526_v32, %v345_v31 }
 0x131   :  { %660 = vmatmul.f32.vlgmr.msrb.gmra.mxu0 %v589_v20 }
 0x136   :  { %v506_v28 = vpop.f32.mrf.mxu3 }
 0x137   :  { %v507_v29 = vadd.f32 %v506_v28, %v487_v27 }
 0x138   :  { %v546_v33 = vpop.f32.mrf.mxu1 }
 0x139   :  { %v590_v30 = vmax.f32 %v507_v29, 0.0  ;;  %v547_v36 = vadd.f32 %v546_v33, %v527_v34 }
 0x13b   :  { %680 = vmatmul.f32.vlgmr.msrb.gmra.mxu1 %v590_v30 }
 0x146   :  { %v566_v35 = vpop.f32.mrf.mxu2 }
 0x147   :  { %v567_v37 = vadd.f32 %v566_v35, %v547_v36 }
 0x14e   :  { %v586_v38 = vpop.f32.mrf.mxu3 }
 0x14f   :  { %v587_v39 = vadd.f32 %v586_v38, %v567_v37 }
 0x151   :  { %v591_v40 = vmax.f32 %v587_v39, 0.0 }
 0x153   :  { %700 = vmatmul.f32.vlgmr.msrb.gmra.mxu2 %v591_v40 }
 0x1ae   :  { %v661_v42 = vpop.f32.mrf.mxu0 }
 0x1af   :  { %v662_v44 = vadd.f32 %v719_v41, %v661_v42 }
 0x1b8   :  { %v681_v43 = vpop.f32.mrf.mxu1 }
 0x1b9   :  { %v682_v45 = vadd.f32 %v681_v43, %v662_v44 }
 0x1d6   :  { %v701_v46 = vpop.f32.mrf.mxu2 }
 0x1d7   :  { %v702_v47 = vadd.f32 %v701_v46, %v682_v45 }
 0x1d9   :  { %720 = vtanh.f32 %v702_v47 }
 0x1df   :  { %v721_v48 = vpop.eup %720 }
 0x1e0   :  { %706 = vst.msk [vmem:[%s1020_s7] sm:$0xff] %vm705_vm1, %v721_v48 }
 0x1e1   :  { %711 = vsyncpa [#allocation3], 1 }

</bundles_post_ra>
